<compile_context>
chip_gen: v7x
topology: tpu7x:2x2x1
jax: 0.10.0
libtpu: 0.0.40
codegen_flags: <defaults>
</compile_context>

<pallas_src>
import functools

import jax
import jax.numpy as jnp
from jax import lax
from jax.experimental import pallas as pl
from jax.experimental.pallas import tpu as pltpu


def _masked_bce_partial_kernel(pred_ref, label_ref, nvm_ref, sm_ref, out_ref, *,
                               bt, tm, batch, m_total, binary_labels,
                               mask_batch, mask_cols):
    """Writes one (8,128) f32 tile whose total equals this block's masked-BCE sum."""
    p = pred_ref[...].astype(jnp.float32)      # (bt, N, tm)  upcast on load
    y = label_ref[...].astype(jnp.float32)     # (bt, N, tm)
    nvm = nvm_ref[...]                         # (bt, N, 1)   = -(vertex * pairwise)
    sm = sm_ref[...]                           # (bt, 1, tm)  = seq mask

    if binary_labels:
        # Labels strictly {0,1}: one log per element instead of two.
        q = jnp.where(y != 0.0, p, 1.0 - p)
        inner = jnp.maximum(jnp.log(q), -100.0)
    else:
        log_p = jnp.maximum(jnp.log(p), -100.0)          # PyTorch BCELoss log clamp
        log_1mp = jnp.maximum(jnp.log(1.0 - p), -100.0)
        inner = y * log_p + (1.0 - y) * log_1mp

    # nvm carries the BCE minus sign, so this equals bce * vertex * seq * pairwise.
    masked = inner * (nvm * sm)                # (bt, N, tm)

    # Batch fold (leading axis).  If the block overhangs the true batch, drop
    # out-of-range rows with scalar-predicated selects: garbage rows can hold
    # NaN, and NaN * 0 would poison a plain masked sum.
    if mask_batch:
        b0 = pl.program_id(0) * bt
        acc = jnp.where(b0 < batch, masked[0], 0.0)
        for b in range(1, bt):
            acc = acc + jnp.where(b0 + b < batch, masked[b], 0.0)
    else:
        acc = jnp.sum(masked, axis=0)          # (N, tm), pure VPU adds

    # Column guard for an M tile that overhangs the true M (lane-dim iota).
    if mask_cols:
        m_idx = lax.broadcasted_iota(jnp.int32, (1, tm), 1) + pl.program_id(1) * tm
        acc = jnp.where(m_idx < m_total, acc, 0.0)

    # Reduce (N, tm) -> (8, 128) with tile-aligned slices + VPU adds (no
    # cross-lane XLU reduce) when shapes allow; scalar fallback otherwise.
    n = acc.shape[0]
    if n % 8 == 0 and tm % 128 == 0:
        folded = acc[:, 0:128]
        for lg in range(1, tm // 128):
            folded = folded + acc[:, lg * 128:(lg + 1) * 128]
        tile = folded[0:8, :]
        for sg in range(1, n // 8):
            tile = tile + folded[sg * 8:(sg + 1) * 8, :]
    else:
        s = jnp.sum(acc)
        r = lax.broadcasted_iota(jnp.int32, (8, 128), 0)
        c = lax.broadcasted_iota(jnp.int32, (8, 128), 1)
        tile = jnp.where((r == 0) & (c == 0), s, 0.0)

    out_ref[...] = tile[None, None]            # (1, 1, 8, 128), lane-dense store


def _pick_tiles(B, N, M, itemsize, block_batch, block_m):
    """Generation-aware block sizing from a simple per-block VMEM model."""
    try:
        info = pltpu.get_tpu_info()
        vmem_cap = int(getattr(info, "vmem_capacity_bytes", 64 * 2**20))
    except Exception:
        vmem_cap = 64 * 2**20
    # Scoped limit with headroom: 96 MiB on 128-MiB parts, 48 MiB on v7x.
    vmem_limit = int(min(96 * 2**20, (vmem_cap * 3) // 4))
    budget = max(2 * 2**20, vmem_limit - 4 * 2**20)
    # Per block: 2 big operands x 2 pipeline buffers x input dtype
    #            + ~6 live f32 intermediates from the elementwise chain.
    bytes_per_elem = 4 * itemsize + 24
    max_elems = max(8 * 128, budget // bytes_per_elem)

    if block_m is not None:
        tm = int(block_m)
    elif M <= 128 or N * M <= max_elems:
        tm = M
    else:
        tm = min(M, max(128, ((max_elems // N) // 128) * 128))
    grid_m = pl.cdiv(M, tm)

    if block_batch is not None:
        bt = int(block_batch)
    else:
        bt = max(1, min(B, max_elems // max(1, N * tm)))
        if B >= 2:
            # Keep >= 2 batch blocks so the "parallel" axis shards across both
            # v7x TensorCores (negligible cost on single-core generations).
            bt = min(bt, pl.cdiv(B, 2))
    grid_b = pl.cdiv(B, bt)
    return bt, tm, grid_b, grid_m, vmem_limit


def masked_bce_loss(pred, label, pairwise_mask, vertex_mask, seq_mask, *,
                    binary_labels=False, block_batch=None, block_m=None):
    """Numerically matches Masked_BCELoss.forward (PyTorch)."""
    B, N, M = pred.shape
    if block_m is not None and not (block_m == M or block_m % 128 == 0):
        raise ValueError("block_m must equal M or be a multiple of 128")

    pm = pairwise_mask.reshape(B).astype(jnp.float32)
    # Fold pairwise mask into the vertex mask; pre-negate so the BCE negation
    # is folded into the mask multiply inside the kernel.
    vmask = vertex_mask.reshape(B, -1).astype(jnp.float32)
    smask = seq_mask.reshape(B, -1).astype(jnp.float32)
    nvm = (-(vmask * pm[:, None]))[:, :, None]      # (B, N, 1)
    sm = smask[:, None, :]                          # (B, 1, M)
    denom = jnp.maximum(jnp.sum(pm), 1e-10)

    itemsize = jnp.dtype(pred.dtype).itemsize
    bt, tm, grid_b, grid_m, vmem_limit = _pick_tiles(
        B, N, M, itemsize, block_batch, block_m)

    kernel = functools.partial(
        _masked_bce_partial_kernel,
        bt=bt, tm=tm, batch=B, m_total=M, binary_labels=binary_labels,
        mask_batch=(grid_b * bt > B), mask_cols=(grid_m * tm > M))

    partials = pl.pallas_call(
        kernel,
        out_shape=jax.ShapeDtypeStruct((grid_b, grid_m, 8, 128), jnp.float32),
        grid_spec=pltpu.PrefetchScalarGridSpec(
            num_scalar_prefetch=0,
            grid=(grid_b, grid_m),
            in_specs=[
                pl.BlockSpec((bt, N, tm), lambda g, j: (g, 0, j)),   # pred
                pl.BlockSpec((bt, N, tm), lambda g, j: (g, 0, j)),   # label
                pl.BlockSpec((bt, N, 1), lambda g, j: (g, 0, 0)),    # -(vertex*pairwise)
                pl.BlockSpec((bt, 1, tm), lambda g, j: (g, 0, j)),   # seq mask
            ],
            out_specs=pl.BlockSpec((1, 1, 8, 128), lambda g, j: (g, j, 0, 0)),
        ),
        compiler_params=pltpu.CompilerParams(
            dimension_semantics=("parallel", "parallel"),
            vmem_limit_bytes=vmem_limit),
    )(pred, label, nvm, sm)

    return jnp.sum(partials) / denom


def masked_bce_loss_ref(pred, label, pairwise_mask, vertex_mask, seq_mask):
    # Pure-JAX reference (mirrors the PyTorch module exactly).
    B = pred.shape[0]
    pred = pred.astype(jnp.float32)
    label = label.astype(jnp.float32)
    log_p = jnp.maximum(jnp.log(pred), -100.0)
    log_1mp = jnp.maximum(jnp.log(1.0 - pred), -100.0)
    loss_all = -(label * log_p + (1.0 - label) * log_1mp)
    loss_mask = (vertex_mask[:, :, None] * seq_mask[:, None, :]
                 * pairwise_mask.reshape(B, 1, 1))
    return jnp.sum(loss_all * loss_mask) / jnp.maximum(jnp.sum(pairwise_mask), 1e-10)


if __name__ == "__main__":
    B, N, M = 3, 16, 256
    key = jax.random.PRNGKey(0)
    k1, k2, k3, k4 = jax.random.split(key, 4)

    pred = jax.nn.sigmoid(jax.random.normal(k1, (B, N, M), dtype=jnp.float32))
    label = jax.random.bernoulli(k2, 0.3, (B, N, M)).astype(jnp.float32)
    vertex_mask = (jax.random.uniform(k3, (B, N)) < 0.8).astype(jnp.float32)
    seq_mask = (jax.random.uniform(k4, (B, M)) < 0.7).astype(jnp.float32)
    pairwise_mask = jnp.array([1.0, 1.0, 0.0], dtype=jnp.float32)

    ref = masked_bce_loss_ref(pred, label, pairwise_mask, vertex_mask, seq_mask)

    # 1) Auto tiling: B=3 -> bt=2, grid_b=2 (exercises the batch-overhang mask,
    #    no padding copy of pred/label).
    out = jax.block_until_ready(
        masked_bce_loss(pred, label, pairwise_mask, vertex_mask, seq_mask))
    assert jnp.allclose(out, ref, rtol=1e-5, atol=1e-5), (out, ref)

    # 2) Binary-label single-log fast path (labels here are strictly 0/1).
    out_bin = jax.block_until_ready(
        masked_bce_loss(pred, label, pairwise_mask, vertex_mask, seq_mask,
                        binary_labels=True))
    assert jnp.allclose(out_bin, ref, rtol=1e-5, atol=1e-5), (out_bin, ref)

    # 3) bf16 pred/label in HBM, upcast inside the kernel.
    pred_bf, label_bf = pred.astype(jnp.bfloat16), label.astype(jnp.bfloat16)
    ref_bf = masked_bce_loss_ref(pred_bf.astype(jnp.float32),
                                 label_bf.astype(jnp.float32),
                                 pairwise_mask, vertex_mask, seq_mask)
    out_bf = jax.block_until_ready(
        masked_bce_loss(pred_bf, label_bf, pairwise_mask, vertex_mask, seq_mask))
    assert jnp.allclose(out_bf, ref_bf, rtol=1e-4, atol=1e-5), (out_bf, ref_bf)

    # 4) Force M tiling (grid_m=2) with batch blocks of 1 (no overhang anywhere).
    out_mt = jax.block_until_ready(
        masked_bce_loss(pred, label, pairwise_mask, vertex_mask, seq_mask,
                        block_batch=1, block_m=128))
    assert jnp.allclose(out_mt, ref, rtol=1e-5, atol=1e-5), (out_mt, ref)

    # 5) Ragged N and M: column-overhang masking + scalar-reduce fallback path.
    B2, N2, M2 = 2, 12, 200
    p2 = jax.nn.sigmoid(jax.random.normal(k1, (B2, N2, M2), dtype=jnp.float32))
    y2 = jax.random.bernoulli(k2, 0.4, (B2, N2, M2)).astype(jnp.float32)
    vm2 = (jax.random.uniform(k3, (B2, N2)) < 0.9).astype(jnp.float32)
    sm2 = (jax.random.uniform(k4, (B2, M2)) < 0.6).astype(jnp.float32)
    pw2 = jnp.array([1.0, 1.0], dtype=jnp.float32)
    ref2 = masked_bce_loss_ref(p2, y2, pw2, vm2, sm2)
    out2 = jax.block_until_ready(
        masked_bce_loss(p2, y2, pw2, vm2, sm2, block_batch=1, block_m=128))
    assert jnp.allclose(out2, ref2, rtol=1e-5, atol=1e-5), (out2, ref2)

    print("KERNEL_OK")
</pallas_src>

<mosaic_0001>
module attributes {stable_mosaic.version = 11 : i64} {
  func.func @_masked_bce_partial_kernel(%arg0: i32, %arg1: i32, %arg2: memref<2x16x256xf32, #tpu.memory_space<vmem>>, %arg3: memref<2x16x256xf32, #tpu.memory_space<vmem>>, %arg4: memref<2x16x1xf32, #tpu.memory_space<vmem>>, %arg5: memref<2x1x256xf32, #tpu.memory_space<vmem>>, %arg6: memref<1x1x8x128xf32, #tpu.memory_space<vmem>>) attributes {dimension_semantics = [#tpu.dimension_semantics<parallel>, #tpu.dimension_semantics<parallel>], iteration_bounds = array<i64: 2, 1>, scalar_prefetch = 0 : i64, scratch_operands = 0 : i64, tpu.core_type = #tpu.core_type<tc>, window_params = [{transform_indices = @transform_0, window_bounds = array<i64: 2, 16, 256>}, {transform_indices = @transform_1, window_bounds = array<i64: 2, 16, 256>}, {transform_indices = @transform_2, window_bounds = array<i64: 2, 16, 1>}, {transform_indices = @transform_3, window_bounds = array<i64: 2, 1, 256>}, {transform_indices = @transform_4, window_bounds = array<i64: 1, 1, 8, 128>}]} {
    %c0 = arith.constant 0 : index
    %c0_0 = arith.constant 0 : index
    %c0_1 = arith.constant 0 : index
    %0 = vector.load %arg2[%c0, %c0_0, %c0_1] : memref<2x16x256xf32, #tpu.memory_space<vmem>>, vector<2x16x256xf32>
    %c0_2 = arith.constant 0 : index
    %c0_3 = arith.constant 0 : index
    %c0_4 = arith.constant 0 : index
    %1 = vector.load %arg3[%c0_2, %c0_3, %c0_4] : memref<2x16x256xf32, #tpu.memory_space<vmem>>, vector<2x16x256xf32>
    %c0_5 = arith.constant 0 : index
    %c0_6 = arith.constant 0 : index
    %c0_7 = arith.constant 0 : index
    %2 = vector.load %arg4[%c0_5, %c0_6, %c0_7] : memref<2x16x1xf32, #tpu.memory_space<vmem>>, vector<2x16x1xf32>
    %c0_8 = arith.constant 0 : index
    %c0_9 = arith.constant 0 : index
    %c0_10 = arith.constant 0 : index
    %3 = vector.load %arg5[%c0_8, %c0_9, %c0_10] : memref<2x1x256xf32, #tpu.memory_space<vmem>>, vector<2x1x256xf32>
    %4 = math.log %0 : vector<2x16x256xf32>
    %cst = arith.constant -1.000000e+02 : f32
    %5 = vector.broadcast %cst : f32 to vector<2x16x256xf32>
    %6 = arith.maximumf %4, %5 : vector<2x16x256xf32>
    %cst_11 = arith.constant 1.000000e+00 : f32
    %7 = vector.broadcast %cst_11 : f32 to vector<2x16x256xf32>
    %8 = arith.subf %7, %0 : vector<2x16x256xf32>
    %9 = math.log %8 : vector<2x16x256xf32>
    %cst_12 = arith.constant -1.000000e+02 : f32
    %10 = vector.broadcast %cst_12 : f32 to vector<2x16x256xf32>
    %11 = arith.maximumf %9, %10 : vector<2x16x256xf32>
    %12 = arith.mulf %1, %6 : vector<2x16x256xf32>
    %cst_13 = arith.constant 1.000000e+00 : f32
    %13 = vector.broadcast %cst_13 : f32 to vector<2x16x256xf32>
    %14 = arith.subf %13, %1 : vector<2x16x256xf32>
    %15 = arith.mulf %14, %11 : vector<2x16x256xf32>
    %16 = arith.addf %12, %15 : vector<2x16x256xf32>
    %17 = vector.broadcast %2 : vector<2x16x1xf32> to vector<2x16x256xf32>
    %18 = vector.broadcast %3 : vector<2x1x256xf32> to vector<2x16x256xf32>
    %19 = arith.mulf %17, %18 : vector<2x16x256xf32>
    %20 = arith.mulf %16, %19 : vector<2x16x256xf32>
    %c2_i32 = arith.constant 2 : i32
    %21 = arith.muli %arg0, %c2_i32 : i32
    %c3_i32 = arith.constant 3 : i32
    %22 = arith.cmpi slt, %21, %c3_i32 : i32
    %23 = vector.extract_strided_slice %20 {offsets = [0, 0, 0], sizes = [1, 16, 256], strides = [1, 1, 1]} : vector<2x16x256xf32> to vector<1x16x256xf32>
    %24 = vector.shape_cast %23 : vector<1x16x256xf32> to vector<16x256xf32>
    %cst_14 = arith.constant 0.000000e+00 : f32
    %25 = vector.broadcast %cst_14 : f32 to vector<16x256xf32>
    %26 = arith.select %22, %24, %25 : vector<16x256xf32>
    %c1_i32 = arith.constant 1 : i32
    %27 = arith.addi %21, %c1_i32 : i32
    %c3_i32_15 = arith.constant 3 : i32
    %28 = arith.cmpi slt, %27, %c3_i32_15 : i32
    %29 = vector.extract_strided_slice %20 {offsets = [1, 0, 0], sizes = [1, 16, 256], strides = [1, 1, 1]} : vector<2x16x256xf32> to vector<1x16x256xf32>
    %30 = vector.shape_cast %29 : vector<1x16x256xf32> to vector<16x256xf32>
    %cst_16 = arith.constant 0.000000e+00 : f32
    %31 = vector.broadcast %cst_16 : f32 to vector<16x256xf32>
    %32 = arith.select %28, %30, %31 : vector<16x256xf32>
    %33 = arith.addf %26, %32 : vector<16x256xf32>
    %34 = vector.extract_strided_slice %33 {offsets = [0, 0], sizes = [16, 128], strides = [1, 1]} : vector<16x256xf32> to vector<16x128xf32>
    %35 = vector.extract_strided_slice %33 {offsets = [0, 128], sizes = [16, 128], strides = [1, 1]} : vector<16x256xf32> to vector<16x128xf32>
    %36 = arith.addf %34, %35 : vector<16x128xf32>
    %37 = vector.extract_strided_slice %36 {offsets = [0, 0], sizes = [8, 128], strides = [1, 1]} : vector<16x128xf32> to vector<8x128xf32>
    %38 = vector.extract_strided_slice %36 {offsets = [8, 0], sizes = [8, 128], strides = [1, 1]} : vector<16x128xf32> to vector<8x128xf32>
    %39 = arith.addf %37, %38 : vector<8x128xf32>
    %40 = vector.shape_cast %39 : vector<8x128xf32> to vector<1x1x8x128xf32>
    %c0_17 = arith.constant 0 : index
    %c0_18 = arith.constant 0 : index
    %c0_19 = arith.constant 0 : index
    %c0_20 = arith.constant 0 : index
    %41 = vector.load %arg6[%c0_17, %c0_18, %c0_19, %c0_20] : memref<1x1x8x128xf32, #tpu.memory_space<vmem>>, vector<1x1x8x128xf32>
    tpu.vector_store %arg6[%c0_17, %c0_18, %c0_19, %c0_20], %40 {strides = array<i32>} : memref<1x1x8x128xf32, #tpu.memory_space<vmem>>, vector<1x1x8x128xf32>,
    return
  }
  func.func @transform_0(%arg0: i32, %arg1: i32) -> (i32, i32, i32) {
    %c0_i32 = arith.constant 0 : i32
    %c0_i32_0 = arith.constant 0 : i32
    return %arg0, %c0_i32, %arg1 : i32, i32, i32
  }
  func.func @transform_1(%arg0: i32, %arg1: i32) -> (i32, i32, i32) {
    %c0_i32 = arith.constant 0 : i32
    %c0_i32_0 = arith.constant 0 : i32
    return %arg0, %c0_i32, %arg1 : i32, i32, i32
  }
  func.func @transform_2(%arg0: i32, %arg1: i32) -> (i32, i32, i32) {
    %c0_i32 = arith.constant 0 : i32
    %c0_i32_0 = arith.constant 0 : i32
    %c0_i32_1 = arith.constant 0 : i32
    return %arg0, %c0_i32, %c0_i32_0 : i32, i32, i32
  }
  func.func @transform_3(%arg0: i32, %arg1: i32) -> (i32, i32, i32) {
    %c0_i32 = arith.constant 0 : i32
    %c0_i32_0 = arith.constant 0 : i32
    return %arg0, %c0_i32, %arg1 : i32, i32, i32
  }
  func.func @transform_4(%arg0: i32, %arg1: i32) -> (i32, i32, i32, i32) {
    %c0_i32 = arith.constant 0 : i32
    %c0_i32_0 = arith.constant 0 : i32
    %c0_i32_1 = arith.constant 0 : i32
    return %arg0, %arg1, %c0_i32, %c0_i32_0 : i32, i32, i32, i32
  }
}

</mosaic_0001>

<bundles_post_ra>
// kernel: tpu_custom_call.1
= control target key start
LH: loop header
LB: loop body
LE: loop exit
PB: predicated region body
PF: predicated region fallthrough
CT: control target
= control target key end

     0   :  { %9 = vsyncpa [#allocation3], 0  ;;  %s1431_s0 = inlined_call_operand.hbm [shape: f32[3,16,256], index: 0, kind: input, shape index: {}]   ;;  %s1432_s1 = inlined_call_operand.hbm [shape: f32[3,16,256], index: 1, kind: input, shape index: {}]   ;;  %s1433_s2 = inlined_call_operand.vmem [shape: f32[3,16,1], index: 2, kind: input, shape index: {}]   ;;  %s1434_s3 = inlined_call_operand.vmem [shape: f32[3,1,256], index: 3, kind: input, shape index: {}]   ;;  %s1435_s4 = inlined_call_operand.hbm [shape: f32[2,1,8,128], index: 4, kind: output, shape index: {}]  }
   0x1   :  { %11 = vsyncpa [#allocation3 + $0x1], 0 }
   0x2   :  { %12 = vsyncpa [#allocation6], 0 }
   0x3   :  { %14 = vsyncpa [#allocation6 + $0x1], 0 }
   0x4   :  { %15 = vsyncpa [#allocation4], 0 }
   0x5   :  { %17 = vsyncpa [#allocation4 + $0x1], 0  ;;  %s1097_s15 = smov 0   ;;  %s1099_s16 = smov 0  }
   0x6   :  { %s1101_s17 = smov 0   ;;  %s1103_s18 = smov 0  }
   0x7   :  { %s1105_s19 = smov 0   ;;  %s1107_s20 = smov 0  }
   0x8 LB: > { %s771_s21 = sadd.s32 4294967295, %s1062_s20   ;;  %s772_s22 = sadd.s32 4294967294, %s1062_s20   ;;  %s1062_s20 = sphi %s1107_s20, %s23_s20   ;;  %s1058_s19 = sphi %s1105_s19, %s1452_s19   ;;  %s1054_s18 = sphi %s1103_s18, %s1451_s18   ;;  %s1050_s17 = sphi %s1101_s17, %s1450_s17   ;;  %s1046_s16 = sphi %s1099_s16, %s1449_s16   ;;  %s1042_s15 = sphi %s1097_s15, %s1448_s15  }
   0x9   : > { %s35_s23 = sadd.s32 1, %s1058_s19  ;;  %s44_s24 = sadd.s32 1, %s1050_s17 }
   0xa   : > { %p37_p0 = scmp.ge.s32.totalorder %s35_s23, 2  ;;  %p51_p1 = scmp.ne.s32.totalorder %s1050_s17, %s1046_s16 }
   0xb   : > { %p52_p2 = scmp.eq.s32.totalorder %s1062_s20, 0  ;;  %p57_p3 = scmp.ne.s32.totalorder %s1046_s16, %s1042_s15 }
   0xc   : > { %s1454_s23 = smov (%p37_p0, %s35_s23), 0  ;;  %p58_p5 = scmp.eq.s32.totalorder %s771_s21, 0 }
   0xd   : > { %p1138_p4 = por %p52_p2, %p51_p1  ;;  %s39_s26 = ssub.s32 %s1058_s19, %s1454_s23 }
   0xe   : > { %p165_p6 = scmp.eq.s32.totalorder %s771_s21, 1  ;;  %p42_p7 = scmp.eq.s32.totalorder %s39_s26, 0 }
   0xf   : > { %p1144_p8 = por %p58_p5, %p57_p3  ;;  %p171_p10 = scmp.eq.s32.totalorder %s772_s22, 1 }
  0x10   : > { %p1148_p9 = por %p165_p6, %p51_p1  ;;  %p1436_p12 = scmp.ge.s32.totalorder %s1062_s20, 2 }
  0x11   : > { %s1153_s29 = scalar_select %p42_p7, %s1050_s17, %s44_s24  }
  0x12   : > { %s1440_s28 = scalar_select %p1148_p9, 1, 0 }
  0x13   : > { %p1155_p11 = por %p171_p10, %p57_p3  ;;  %187 = sbr.rel (%p1436_p12) target bundleno = 96 (0x60), region = 16 }
  0x15   : > { %s1441_s30 = scalar_select %p1155_p11, 1, 0 }
  0x1a   : > { %190 = sbr.rel (!%p1138_p4) target bundleno = 61 (0x3d), region = 20  ;;  %s191_s5 = sand.u32 (%p1138_p4), 1, %s1050_s17  }
  0x1b   : > { %s776_s6 = sshll.u32 (%p1138_p4), %s1058_s19, 1  ;;  %s775_s7 = sshll.u32 (%p1138_p4), %s191_s5, 6 }
  0x1c   : > { %s198_s8 = ssub.s32 (%p1138_p4), 3, %s776_s6  ;;  %s1169_s11 = scalar_lea.sflag (%p1138_p4), [#allocation3], %s191_s5 }
  0x1d   : > { %p199_p13 = scmp.lt.s32.totalorder (%p1138_p4), %s198_s8, 2  ;;  %s195_s12 = scalar_lea.vmem (%p1138_p4), [#allocation2], %s775_s7 }
  0x21   : > { %s1456_s8 = smov (!%p199_p13, %s198_s8), 2 }
  0x22   : > { %s1166_s9 = sshll.u32 %s1456_s8, 9 }
  0x23   : > { %s205_s10 = ssub.s32 1024, %s1166_s9 }
  0x24   : > { %206 = vsyncadd %s1169_s11, %s205_s10  ;;  %p780_p0 = scmp.ne.s32.totalorder %s1166_s9, 0  ;;  %s814_s13 = sshll.u32 %s1058_s19, 10 }
  0x25   : > { %s1177_s22 = scalar_lea.hbm %s1431_s0, %s814_s13  ;;  %s214_s24 = sshll.u32 %s195_s12, 4  ;;  %s1179_s24 = int_to_ptr.vmem [resolvable:$true] %s214_s24 }
  0x26   : > { %s920_s26 = scalar_lea.hbm %s1177_s22, %s1166_s9  ;;  %s924_s7 = scalar_lea.hbm %s1431_s0, 1536 }
  0x27   : > { %p921_p1 = scmp.ne.s32.totalorder %s1177_s22, %s920_s26  ;;  %p925_p5 = scmp.lt.u32.totalorder %s1177_s22, %s1431_s0 }
  0x28   : > { %p926_p6 = scmp.lt.u32.totalorder %s924_s7, %s920_s26  ;;  %p928_p10 = scmp.lt.u32.totalorder %s920_s26, %s1177_s22 }
  0x29   : > { %p922_p2 = pnand %p921_p1, %p780_p0 }
  0x2a   : > { %p927_p7 = por %p926_p6, %p925_p5 }
  0x2b   : > { %p923_p3 = pneg %p922_p2 }
  0x2c   : > { %p929_p13 = por %p928_p10, %p927_p7 }
  0x2e   : > { %p930_p12 = pnand %p929_p13, %p923_p3 }
  0x30   : > { %933 = shalt.err (!%p930_p12)
}
  0x31   : > { %s934_s12 = scalar_lea.vmem %s1179_s24, %s1166_s9  ;;  %s1064_s13 = smov [#allocation2]  }
  0x32   : > { %p935_p1 = scmp.ne.s32.totalorder %s1179_s24, %s934_s12  ;;  %s938_s14 = sshll.u32 %s1064_s13, 4  ;;  %s939_s14 = int_to_ptr.vmem [resolvable:$false] %s938_s14 }
  0x33   : > { %s940_s21 = scalar_lea.vmem %s939_s14, 2048  ;;  %p941_p9 = scmp.lt.s32.totalorder %s1179_s24, %s939_s14 }
  0x34   : > { %p936_p2 = pnand %p935_p1, %p780_p0  ;;  %p942_p5 = scmp.lt.s32.totalorder %s940_s21, %s934_s12 }
  0x36   : > { %p937_p11 = pneg %p936_p2  ;;  %p943_p6 = por %p942_p5, %p941_p9 }
  0x38   : > { %p944_p7 = pnand %p943_p6, %p937_p11 }
  0x3a   : > { %947 = shalt.err (!%p944_p7)
}
  0x3b   : > { %s1065_s26 = smov 256   ;;  %s1066_s5 = smov 16  }
  0x3c   : > { %220 = dma.hbm_to_vmem [thread:$0]  (%p780_p0), %s1177_s22, %s1166_s9, %s1179_s24, %s1169_s11, %s1065_s26, %s1065_s26, %s1066_s5  }
  0x3d PF: > { %223 = sbr.rel (!%p1138_p4) target bundleno = 96 (0x60), region = 24  ;;  %s224_s6 = sand.u32 (%p1138_p4), 1, %s1050_s17  }
  0x3e   : > { %s787_s7 = sshll.u32 (%p1138_p4), %s1058_s19, 1  ;;  %s786_s8 = sshll.u32 (%p1138_p4), %s224_s6, 6 }
  0x3f   : > { %s231_s10 = ssub.s32 (%p1138_p4), 3, %s787_s7  ;;  %s1213_s14 = scalar_lea.sflag (%p1138_p4), [#allocation6], %s224_s6 }
  0x40   : > { %p232_p9 = scmp.lt.s32.totalorder (%p1138_p4), %s231_s10, 2  ;;  %s228_s9 = scalar_lea.vmem (%p1138_p4), [#allocation5], %s786_s8 }
  0x44   : > { %s1458_s10 = smov (!%p232_p9, %s231_s10), 2 }
  0x45   : > { %s1210_s12 = sshll.u32 %s1458_s10, 9 }
  0x46   : > { %s238_s13 = ssub.s32 1024, %s1210_s12 }
  0x47   : > { %239 = vsyncadd %s1213_s14, %s238_s13  ;;  %p791_p4 = scmp.ne.s32.totalorder %s1210_s12, 0  ;;  %s820_s25 = sshll.u32 %s1058_s19, 10 }
  0x48   : > { %s1221_s24 = scalar_lea.hbm %s1432_s1, %s820_s25  ;;  %s247_s21 = sshll.u32 %s228_s9, 4  ;;  %s1223_s21 = int_to_ptr.vmem [resolvable:$true] %s247_s21 }
  0x49   : > { %s948_s26 = scalar_lea.hbm %s1221_s24, %s1210_s12  ;;  %s952_s7 = scalar_lea.hbm %s1432_s1, 1536 }
  0x4a   : > { %p949_p11 = scmp.ne.s32.totalorder %s1221_s24, %s948_s26  ;;  %p953_p3 = scmp.lt.u32.totalorder %s1221_s24, %s1432_s1 }
  0x4b   : > { %p954_p10 = scmp.lt.u32.totalorder %s952_s7, %s948_s26  ;;  %p956_p1 = scmp.lt.u32.totalorder %s948_s26, %s1221_s24 }
  0x4c   : > { %p950_p12 = pnand %p949_p11, %p791_p4 }
  0x4d   : > { %p955_p13 = por %p954_p10, %p953_p3 }
  0x4e   : > { %p951_p0 = pneg %p950_p12 }
  0x4f   : > { %p957_p2 = por %p956_p1, %p955_p13 }
  0x51   : > { %p958_p5 = pnand %p957_p2, %p951_p0 }
  0x53   : > { %961 = shalt.err (!%p958_p5)
}
  0x54   : > { %s962_s13 = scalar_lea.vmem %s1223_s21, %s1210_s12  ;;  %s1067_s9 = smov [#allocation5]  }
  0x55   : > { %p963_p6 = scmp.ne.s32.totalorder %s1223_s21, %s962_s13  ;;  %s966_s25 = sshll.u32 %s1067_s9, 4  ;;  %s967_s25 = int_to_ptr.vmem [resolvable:$false] %s966_s25 }
  0x56   : > { %s968_s11 = scalar_lea.vmem %s967_s25, 2048  ;;  %p969_p11 = scmp.lt.s32.totalorder %s1223_s21, %s967_s25 }
  0x57   : > { %p964_p7 = pnand %p963_p6, %p791_p4  ;;  %p970_p12 = scmp.lt.s32.totalorder %s968_s11, %s962_s13 }
  0x59   : > { %p965_p9 = pneg %p964_p7  ;;  %p971_p3 = por %p970_p12, %p969_p11 }
  0x5b   : > { %p972_p10 = pnand %p971_p3, %p965_p9 }
  0x5d   : > { %975 = shalt.err (!%p972_p10)
}
  0x5e   : > { %s1068_s22 = smov 256   ;;  %s1069_s26 = smov 16  }
  0x5f   : > { %253 = dma.hbm_to_vmem [thread:$0]  (%p791_p4), %s1221_s24, %s1210_s12, %s1223_s21, %s1213_s14, %s1068_s22, %s1068_s22, %s1069_s26  }
  0x60 PF: > { %p797_p0 = scmp.ge.s32.totalorder %s1062_s20, 1  ;;  %p299_p13 = scmp.lt.s32.totalorder %s1062_s20, 3 }
  0x62   : > { %p300_p1 = pnand %p797_p0, %p299_p13 }
  0x63   : > { %s1253_s5 = sand.u32 (!%p300_p1), 1, %s1046_s16  }
  0x64   : > { %303 = sbr.rel (%p300_p1) target bundleno = 277 (0x115), region = 36  ;;  %s798_s6 = sshll.u32 (!%p300_p1), %s1253_s5, 6 }
  0x65   : > { %s306_s7 = scalar_lea.sflag (!%p300_p1), [#allocation3], %s1253_s5  ;;  %s1257_s8 = scalar_lea.vmem (!%p300_p1), [#allocation2], %s798_s6 }
  0x6b   : > { %1029 = dma.done.wait (%p1144_p8), %s306_s7, 1024  }
  0x6c   : > { %1031 = vsyncadd (%p1144_p8), %s306_s7, 4294966272  ;;  %s315_s12 = scalar_lea.sflag [#allocation6], %s1253_s5  ;;  %s1264_s14 = scalar_lea.vmem [#allocation5], %s798_s6 }
  0x6d   : > { %1033 = dma.done.wait (%p1144_p8), %s315_s12, 1024  }
  0x6e   : > { %1035 = vsyncadd (%p1144_p8), %s315_s12, 4294966272  ;;  %s1271_s24 = sshll.u32 %s1054_s18, 1  ;;  %v1070_v0 = vmov 0   ;;  %v431_v5 = vld [vmem:[%s1257_s8 + $0x20] sm:$0xff]  ;;  %v432_v6 = vld [vmem:[%s1257_s8 + $0x28] sm:$0xff]  ;;  %v559_v22 = vlaneseq  ;;  %p1445_p6 = scmp.ne.s32.totalorder %s1440_s28, 0 }
  0x6f   : > { %887 = vset.pattern.permute.xlu1 %v1070_v0  ;;  %886 = vset.pattern.permute.xlu0 %v1070_v0  ;;  %p395_p4 = scmp.lt.s32.totalorder %s1271_s24, 2  ;;  %v477_v7 = vsub.f32 1.0, %v431_v5  ;;  %v478_v8 = vsub.f32 1.0, %v432_v6  ;;  %v427_v9 = vld [vmem:[%s1257_s8] sm:$0xff]  ;;  %888 = vlog2.f32 %v431_v5  ;;  %v428_v10 = vld [vmem:[%s1257_s8 + $0x8] sm:$0xff]  ;;  %v433_v13 = vld [vmem:[%s1257_s8 + $0x30] sm:$0xff] }
  0x70   : > { %890 = vlog2.f32 %v432_v6  ;;  %v473_v11 = vsub.f32 1.0, %v427_v9  ;;  %v474_v12 = vsub.f32 1.0, %v428_v10  ;;  %v434_v14 = vld [vmem:[%s1257_s8 + $0x38] sm:$0xff]  ;;  %v479_v15 = vsub.f32 1.0, %v433_v13  ;;  %v429_v17 = vld [vmem:[%s1257_s8 + $0x10] sm:$0xff]  ;;  %s604_s25 = sadd.s32 1, %s1271_s24 }
  0x71   : > { %s1275_s21 = scalar_select %p395_p4, %s1271_s24, 2  ;;  %892 = vlog2.f32 %v477_v7  ;;  %v480_v16 = vsub.f32 1.0, %v434_v14  ;;  %v430_v18 = vld [vmem:[%s1257_s8 + $0x18] sm:$0xff]  ;;  %v475_v20 = vsub.f32 1.0, %v429_v17  ;;  %v1289_v28 = vshrl.u32 %v559_v22, 7  ;;  %v439_v31 = vld [vmem:[%s1264_s14 + $0x20] sm:$0xff] }
  0x72   : > { %894 = vlog2.f32 %v478_v8  ;;  %v476_v23 = vsub.f32 1.0, %v430_v18  ;;  %v440_v32 = vld [vmem:[%s1264_s14 + $0x28] sm:$0xff]  ;;  %p1294_p8 = scmp.lt.s32.totalorder %s604_s25, 3  ;;  %v1299_v34 = vld [vmem:[%s1264_s14] sm:$0xff]  ;;  %v1305_v36 = vld [vmem:[%s1264_s14 + $0x30] sm:$0xff]  ;;  %v517_v52 = vsub.f32 1.0, %v439_v31 }
  0x73   : > { %s823_s10 = sshll.u32 %s1275_s21, 4  ;;  %896 = vlog2.f32 %v427_v9  ;;  %v1302_v35 = vld [vmem:[%s1264_s14 + $0x8] sm:$0xff]  ;;  %s805_s22 = sshll.u32 %s1275_s21, 1  ;;  %v561_v38 = vsub.s32 0, %v1289_v28  ;;  %v565_v39 = vsub.s32 1, %v1289_v28  ;;  %v1311_v40 = vld [vmem:[%s1264_s14 + $0x38] sm:$0xff] }
  0x74   : > { %s399_s27 = scalar_lea.vmem %s1433_s2, %s823_s10  ;;  %898 = vlog2.f32 %v428_v10  ;;  %v1314_v41 = vld [vmem:[%s1264_s14 + $0x10] sm:$0xff]  ;;  %v1317_v42 = vld [vmem:[%s1264_s14 + $0x18] sm:$0xff]  ;;  %s1322_s7 = scalar_lea.vmem %s1434_s3, %s805_s22  ;;  %v518_v53 = vsub.f32 1.0, %v440_v32  ;;  %v513_v57 = vsub.f32 1.0, %v1299_v34  ;;  %v514_v58 = vsub.f32 1.0, %v1302_v35 }
  0x75   : > { %v445_v1 = vld [vmem:[%s399_s27 + $0x10] sm:$0xff]  ;;  %v443_v2 = vld [vmem:[%s399_s27] sm:$0xff]  ;;  %v446_v3 = vld [vmem:[%s399_s27 + $0x18] sm:$0xff]  ;;  %900 = vlog2.f32 %v473_v11  ;;  %s606_s8 = scalar_select %p1294_p8, 1, 0  ;;  %v519_v59 = vsub.f32 1.0, %v1305_v36 }
  0x76   : > { %549 = vperm.xlu1 %887, %v445_v1   ;;  %539 = vperm.xlu0 %886, %v443_v2   ;;  %v444_v4 = vld [vmem:[%s399_s27 + $0x8] sm:$0xff]  ;;  %902 = vlog2.f32 %v474_v12  ;;  %v520_v60 = vsub.f32 1.0, %v1311_v40  ;;  %p596_p2 = scmp.lt.s32.totalorder %s1271_s24, 3  ;;  %v515_v0 = vsub.f32 1.0, %v1314_v41  ;;  %v516_v1 = vsub.f32 1.0, %v1317_v42  ;;  %s800_s14 = sshll.u32 %s1253_s5, 3 }
  0x77   : > { %904 = vlog2.f32 %v433_v13  ;;  %v1334_v12 = vstv %s606_s8  ;;  %s808_s24 = sshll.u32 %s1054_s18, 7  ;;  %s372_s21 = scalar_lea.vmem [#allocation7], %s800_s14 }
  0x78   : > { %906 = vlog2.f32 %v434_v14  ;;  %s1340_s12 = scalar_select %p596_p2, 1, 0  ;;  %vm608_vm0 = vcmp.eq.s32.totalorder %v1334_v12, 1 }
  0x79   : > { %v889_v19 = vpop.eup %888  ;;  %908 = vlog2.f32 %v479_v15  ;;  %s636_s10 = sshll.u32 %s372_s21, 4  ;;  %s1382_s27 = scalar_lea.hbm %s1435_s4, %s808_s24  ;;  %s1384_s10 = int_to_ptr.vmem [resolvable:$true] %s636_s10 }
  0x7a   : > { %554 = vperm.xlu1 %887, %v446_v3   ;;  %544 = vperm.xlu0 %886, %v444_v4   ;;  %v891_v21 = vpop.eup %890  ;;  %910 = vlog2.f32 %v480_v16  ;;  %v458_v44 = vmul.f32 0.6931472, %v889_v19  ;;  %v448_v3 = vld [vmem:[%s1322_s7 + $0x2] sm:$0x3]  ;;  %s622_s25 = scalar_lea.sflag [#allocation4], %s1253_s5  ;;  %s976_s11 = scalar_lea.vmem %s1384_s10, 128 }
  0x7b   : > { %v893_v24 = vpop.eup %892  ;;  %912 = vlog2.f32 %v429_v17  ;;  %v460_v45 = vmul.f32 0.6931472, %v891_v21  ;;  %v570_v16 = vrot.slane %v448_v3, %v561_v38  ;;  %p977_p5 = scmp.ne.s32.totalorder %s1384_s10, %s976_s11  ;;  %s1071_s18 = smov [#allocation7]  }
  0x7c   : > { %v895_v25 = vpop.eup %894  ;;  %914 = vlog2.f32 %v430_v18  ;;  %v490_v46 = vmul.f32 0.6931472, %v893_v24  ;;  %v469_v62 = vmax.f32 %v458_v44, -100.0  ;;  %v447_v24 = vld [vmem:[%s1322_s7] sm:$0x3]  ;;  %s980_s22 = sshll.u32 %s1071_s18, 4  ;;  %s981_s22 = int_to_ptr.vmem [resolvable:$false] %s980_s22 }
  0x7d   : > { %v897_v26 = vpop.eup %896  ;;  %916 = vlog2.f32 %v475_v20  ;;  %v492_v48 = vmul.f32 0.6931472, %v895_v25  ;;  %v470_v63 = vmax.f32 %v460_v45, -100.0  ;;  %p978_p7 = pnand %p977_p5, %p1445_p6  ;;  %s982_s26 = scalar_lea.vmem %s981_s22, 256 }
  0x7e   : > { %v899_v27 = vpop.eup %898  ;;  %918 = vlog2.f32 %v476_v23  ;;  %v450_v49 = vmul.f32 0.6931472, %v897_v26  ;;  %v501_v4 = vmax.f32 %v490_v46, -100.0  ;;  %v509_v20 = vmul.f32 %v469_v62, %v439_v31  ;;  %p983_p11 = scmp.lt.s32.totalorder %s1384_s10, %s981_s22  ;;  %p984_p12 = scmp.lt.s32.totalorder %s982_s26, %s976_s11 }
  0x7f   : > { %v901_v29 = vpop.eup %900  ;;  %v452_v50 = vmul.f32 0.6931472, %v899_v27  ;;  %v502_v5 = vmax.f32 %v492_v48, -100.0  ;;  %v510_v21 = vmul.f32 %v470_v63, %v440_v32  ;;  %v574_v46 = vrot.slane %v448_v3, %v565_v39  ;;  %p979_p9 = pneg %p978_p7 }
  0x80   : > { %v903_v30 = vpop.eup %902  ;;  %v482_v54 = vmul.f32 0.6931472, %v901_v29  ;;  %v465_v6 = vmax.f32 %v450_v49, -100.0  ;;  %v525_v22 = vmul.f32 %v517_v52, %v501_v4  ;;  %p985_p3 = por %p984_p12, %p983_p11 }
  0x81   : > { %v905_v33 = vpop.eup %904  ;;  %v484_v55 = vmul.f32 0.6931472, %v903_v30  ;;  %v466_v7 = vmax.f32 %v452_v50, -100.0  ;;  %v526_v23 = vmul.f32 %v518_v53, %v502_v5 }
  0x82   : > { %v907_v37 = vpop.eup %906  ;;  %v497_v8 = vmax.f32 %v482_v54, -100.0  ;;  %v462_v10 = vmul.f32 0.6931472, %v905_v33  ;;  %v505_v25 = vmul.f32 %v465_v6, %v1299_v34  ;;  %v566_v34 = vrot.slane %v447_v24, %v565_v39  ;;  %p986_p10 = pnand %p985_p3, %p979_p9 }
  0x83   : > { %v909_v43 = vpop.eup %908  ;;  %v498_v9 = vmax.f32 %v484_v55, -100.0  ;;  %v464_v11 = vmul.f32 0.6931472, %v907_v37  ;;  %v506_v26 = vmul.f32 %v466_v7, %v1302_v35  ;;  %v598_v35 = vstv %s1340_s12 }
  0x84   : > { %v911_v47 = vpop.eup %910  ;;  %v494_v13 = vmul.f32 0.6931472, %v909_v43  ;;  %v521_v27 = vmul.f32 %v513_v57, %v497_v8  ;;  %v471_v29 = vmax.f32 %v462_v10, -100.0  ;;  %v533_v48 = vadd.f32 %v525_v22, %v509_v20 }
  0x85   : > { %v913_v51 = vpop.eup %912  ;;  %v496_v14 = vmul.f32 0.6931472, %v911_v47  ;;  %v522_v30 = vmul.f32 %v514_v58, %v498_v9  ;;  %v472_v33 = vmax.f32 %v464_v11, -100.0  ;;  %v562_v47 = vrot.slane %v447_v24, %v561_v38 }
  0x86   : > { %v915_v56 = vpop.eup %914  ;;  %v454_v15 = vmul.f32 0.6931472, %v913_v51  ;;  %v503_v37 = vmax.f32 %v494_v13, -100.0  ;;  %v534_v49 = vadd.f32 %v526_v23, %v510_v21  ;;  %v529_v50 = vadd.f32 %v521_v27, %v505_v25 }
  0x87   : > { %v917_v61 = vpop.eup %916  ;;  %v456_v17 = vmul.f32 0.6931472, %v915_v56  ;;  %v504_v43 = vmax.f32 %v496_v14, -100.0  ;;  %v511_v51 = vmul.f32 %v471_v29, %v1305_v36  ;;  %v530_v52 = vadd.f32 %v522_v30, %v506_v26 }
  0x88   : > { %v919_v2 = vpop.eup %918  ;;  %v486_v18 = vmul.f32 0.6931472, %v917_v61  ;;  %v467_v44 = vmax.f32 %v454_v15, -100.0  ;;  %v512_v53 = vmul.f32 %v472_v33, %v1311_v40  ;;  %v527_v54 = vmul.f32 %v519_v59, %v503_v37 }
  0x89   : > { %v488_v19 = vmul.f32 0.6931472, %v919_v2  ;;  %v468_v31 = vmax.f32 %v456_v17, -100.0  ;;  %v528_v55 = vmul.f32 %v520_v60, %v504_v43  ;;  %vm1357_vm1 = vcmp.eq.s32.totalorder %v598_v35, 1 }
  0x8a   : > { %v499_v32 = vmax.f32 %v486_v18, -100.0  ;;  %v507_v58 = vmul.f32 %v467_v44, %v1314_v41  ;;  %v535_v41 = vadd.f32 %v527_v54, %v511_v51 }
  0x8b   : > { %v500_v45 = vmax.f32 %v488_v19, -100.0  ;;  %v508_v38 = vmul.f32 %v468_v31, %v1317_v42  ;;  %v536_v42 = vadd.f32 %v528_v55, %v512_v53 }
  0x8c   : > { %v523_v61 = vmul.f32 %v515_v0, %v499_v32 }
  0x8d   : > { %v524_v28 = vmul.f32 %v516_v1, %v500_v45 }
  0x8e   : > { %v531_v1 = vadd.f32 %v523_v61, %v507_v58 }
  0x8f   : > { %v532_v5 = vadd.f32 %v524_v28, %v508_v38 }
  0xf5   : > { %v550_v56 = vpop.permute.xlu1 %549  ;;  %v540_v57 = vpop.permute.xlu0 %539 }
  0xf6   : > { %v583_v39 = vmul.f32 %v570_v16, %v550_v56  ;;  %v584_v62 = vmul.f32 %v574_v46, %v550_v56  ;;  %v579_v63 = vmul.f32 %v562_v47, %v540_v57  ;;  %v580_v2 = vmul.f32 %v566_v34, %v540_v57 }
  0xf8   : > { %v591_v40 = vmul.f32 %v583_v39, %v533_v48  ;;  %v592_v59 = vmul.f32 %v584_v62, %v534_v49  ;;  %v587_v60 = vmul.f32 %v579_v63, %v529_v50  ;;  %v588_v3 = vmul.f32 %v580_v2, %v530_v52 }
  0xf9   : > { %v555_v4 = vpop.permute.xlu1 %554  ;;  %v545_v0 = vpop.permute.xlu0 %544 }
  0xfa   : > { %v609_v6 = vsel %vm608_vm0, %v591_v40, 0.0  ;;  %v610_v7 = vsel %vm608_vm0, %v592_v59, 0.0  ;;  %v600_v8 = vsel %vm1357_vm1, %v587_v60, 0.0  ;;  %v601_v9 = vsel %vm1357_vm1, %v588_v3, 0.0 }
  0xfb   : > { %v613_v10 = vadd.f32 %v609_v6, %v600_v8  ;;  %v614_v11 = vadd.f32 %v610_v7, %v601_v9  ;;  %v585_v13 = vmul.f32 %v570_v16, %v555_v4  ;;  %v586_v14 = vmul.f32 %v574_v46, %v555_v4 }
  0xfc   : > { %v581_v15 = vmul.f32 %v562_v47, %v545_v0  ;;  %v582_v17 = vmul.f32 %v566_v34, %v545_v0 }
  0xfd   : > { %v617_v18 = vadd.f32 %v614_v11, %v613_v10  ;;  %v593_v19 = vmul.f32 %v585_v13, %v535_v41  ;;  %v594_v20 = vmul.f32 %v586_v14, %v536_v42 }
  0xfe   : > { %v589_v21 = vmul.f32 %v581_v15, %v531_v1  ;;  %v590_v22 = vmul.f32 %v582_v17, %v532_v5 }
  0xff   : > { %v611_v23 = vsel %vm608_vm0, %v593_v19, 0.0  ;;  %v612_v24 = vsel %vm608_vm0, %v594_v20, 0.0 }
 0x100   : > { %v602_v16 = vsel %vm1357_vm1, %v589_v21, 0.0  ;;  %v603_v25 = vsel %vm1357_vm1, %v590_v22, 0.0 }
 0x101   : > { %v615_v26 = vadd.f32 %v611_v23, %v602_v16  ;;  %v616_v27 = vadd.f32 %v612_v24, %v603_v25 }
 0x103   : > { %v618_v29 = vadd.f32 %v616_v27, %v615_v26 }
 0x105   : > { %v619_v30 = vadd.f32 %v618_v29, %v617_v18 }
 0x107   : > { %620 = vst [vmem:[%s372_s21] sm:$0xff] %v619_v30 }
 0x108   : > { %989 = shalt.err (!%p986_p10)
}
 0x109   : > { %s990_s5 = scalar_lea.hbm %s1382_s27, 128  ;;  %s994_s8 = scalar_lea.hbm %s1435_s4, 256 }
 0x10a   : > { %p991_p0 = scmp.ne.s32.totalorder %s1382_s27, %s990_s5  ;;  %p995_p4 = scmp.lt.u32.totalorder %s1382_s27, %s1435_s4 }
 0x10b   : > { %p996_p8 = scmp.lt.u32.totalorder %s994_s8, %s990_s5  ;;  %p998_p5 = scmp.lt.u32.totalorder %s990_s5, %s1382_s27 }
 0x10c   : > { %p992_p13 = pnand %p991_p0, %p1445_p6 }
 0x10d   : > { %p997_p2 = por %p996_p8, %p995_p4 }
 0x10e   : > { %p993_p1 = pneg %p992_p13 }
 0x10f   : > { %p999_p7 = por %p998_p5, %p997_p2 }
 0x111   : > { %p1000_p9 = pnand %p999_p7, %p993_p1 }
 0x113   : > { %1003 = shalt.err (!%p1000_p9)
}
 0x114   : > { %826 = dma.vmem_to_hbm [thread:$0]  (%p1445_p6), %s1384_s10, 128, %s1382_s27, %s622_s25  }
 0x115 PF: > { %s648_s24 = sand.u32 1, %s1042_s15   ;;  %p1446_p11 = scmp.ne.s32.totalorder %s1441_s30, 0 }
 0x116   : > { %p1447_p12 = scmp.ge.s32.totalorder %s1062_s20, 2  ;;  %s649_s21 = scalar_lea.sflag [#allocation4], %s648_s24 }
 0x118   : > { %p829_p3 = pnand %p1447_p12, %p1446_p11 }
 0x11a   : > { %1037 = dma.done.wait (!%p829_p3), %s649_s21, 128  }
 0x11b   : > { %1039 = vsyncadd (!%p829_p3), %s649_s21, 4294967168  ;;  %s23_s20 = sadd.s32 1, %s1062_s20   ;;  %s1448_s15 = smov %s1046_s16 }
 0x11c   : > { %p20_p10 = scmp.ge.s32.totalorder %s23_s20, 4   ;;  %s1449_s16 = smov %s1050_s17 }
 0x11d   : > { %s1450_s17 = smov %s1153_s29  ;;  %s1451_s18 = smov %s1058_s19 }
 0x11e   : > { %s1452_s19 = smov %s1454_s23  ;;  %22 = sbr.rel (!%p20_p10) target bundleno = 8 (0x8), region = 100 }
 0x125   :  { %654 = vsyncpa [#allocation3], 1 }
 0x126   :  { %656 = vsyncpa [#allocation3 + $0x1], 1 }
 0x127   :  { %657 = vsyncpa [#allocation6], 1 }
 0x128   :  { %659 = vsyncpa [#allocation6 + $0x1], 1 }
 0x129   :  { %660 = vsyncpa [#allocation4], 1 }
 0x12a   :  { %662 = vsyncpa [#allocation4 + $0x1], 1 }

</bundles_post_ra>
